<compile_context>
chip_gen: v5e
topology: v5e:2x2
jax: 0.10.0
libtpu: 0.0.40
codegen_flags: <defaults>
</compile_context>

<pallas_src>
import math

import jax
import jax.numpy as jnp
from jax.experimental import pallas as pl
from jax.experimental.pallas import tpu as pltpu


# ---------------------------------------------------------------------------
# compute_gammas + per-batch denoiser bias, in plain jnp (perf review: a
# Pallas launch for ~2*B*D^2 FLOPs is pure overhead; XLA fuses this instead).
#   emb  = gamma_embedding(sample_gammas, D)   ([cos | sin], Palette ordering)
#   h    = SiLU(emb @ w1 + b1);  e = h @ w2 + b2
#   bias = e @ p_dn                            (per-batch stand-in denoiser bias)
# NOTE: freqs use exp(-log(1e4)*arange(half)/half) and [cos|sin] ordering;
# verify divisor (half vs half-1) and ordering against any real pretrained
# cond_embed weights before loading them.
# ---------------------------------------------------------------------------
def compute_gamma_bias(params, sample_gammas):
    g = sample_gammas.reshape(-1, 1).astype(jnp.float32)        # (B, 1)
    d_in = params["w1"].shape[0]
    half = d_in // 2
    freqs = jnp.exp(
        -math.log(10000.0) * jnp.arange(half, dtype=jnp.float32) / half)
    args = g * freqs[None, :]                                   # (B, half)
    emb = jnp.concatenate([jnp.cos(args), jnp.sin(args)], axis=-1)  # (B, D)
    h = emb @ params["w1"] + params["b1"]
    h = h * jax.nn.sigmoid(h)                                   # SiLU
    e = h @ params["w2"] + params["b2"]                         # cond_embed out
    return e @ params["p_dn"]                                   # (B, C) bias


# ---------------------------------------------------------------------------
# Fused kernel: q_sample + mask blend + stand-in denoiser
#   y_noisy = sqrt(g)*y_0 + sqrt(1-g)*noise                   (q_sample)
#   y_noisy = y_0 + clamp(mask,0,1) * (y_noisy - y_0)         (mask blend)
#   out     = w_cond @ y_cond + w_noisy @ y_noisy + bias(gamma-embed)
# Data layout: (bpb, C, hw_tile) blocks -- channels (and folded batch) on
# sublanes, HW on lanes (lane-dense unmasked stores). y_noisy and the channel
# concat never touch HBM.
# TODO(synk): the real denoise_fn (UNet / ResnetGenerator_attn_diff) is an
# injected external module; it is replaced by this 1x1-conv + gamma-bias
# stand-in. cls / ref / dropout_prob are not used by the stand-in.
# ---------------------------------------------------------------------------
def _fused_denoise_kernel(pb_ref, y0_ref, nz_ref, yc_ref, m_ref,
                          wc_ref, wn_ref, o_ref):
    bpb, C, _ = y0_ref.shape
    f32 = jnp.float32

    pb = pb_ref[...]                                  # (bpb, 3, C, 1) f32
    sqrt_g = pb[:, 0]                                 # (bpb, C, 1)
    sqrt_1mg = pb[:, 1]                               # (bpb, C, 1)
    bias = pb[:, 2]                                   # (bpb, C, 1)

    y0 = y0_ref[...].astype(f32)                      # (bpb, C, hw)
    nz = nz_ref[...].astype(f32)
    yc = yc_ref[...].astype(f32)
    m = jnp.clip(m_ref[...].astype(f32), 0.0, 1.0)    # (bpb, 1, hw)

    # q_sample + mask blend on the full (bpb*C)-sublane block (VPU).
    y_noisy = sqrt_g * y0 + sqrt_1mg * nz
    y_noisy = y0 + m * (y_noisy - y0)                 # == m*y_noisy + (1-m)*y0

    wc = wc_ref[...]                                  # (C, C) resident weights
    wn = wn_ref[...]
    # Tiny per-batch 1x1-conv dots; mem-bound kernel so MXU latency is hidden.
    for b in range(bpb):                              # static unroll
        acc = jnp.dot(wc, yc[b], preferred_element_type=f32)
        acc = acc + jnp.dot(wn, y_noisy[b], preferred_element_type=f32)
        o_ref[b] = (acc + bias[b]).astype(o_ref.dtype)


def _pick_hw_tiling(hw, per_elem_bytes, budget_bytes):
    """Return (padded_hw, hw_tile): largest multiple-of-128 tile whose
    double-buffered working set fits `budget_bytes`."""
    cap = max(128, (budget_bytes // max(per_elem_bytes, 1)) // 128 * 128)
    hw128 = ((hw + 127) // 128) * 128
    if hw128 <= cap:
        return hw128, hw128
    tile = None
    t = cap
    while t >= 128:                                   # prefer an exact divisor
        if hw128 % t == 0:
            tile = t
            break
        t -= 128
    if tile is None:                                  # no divisor: pad instead
        tile = cap
    hw_padded = ((hw128 + tile - 1) // tile) * tile
    return hw_padded, tile


def fused_denoise(params, sample_gammas, y_0, noise, y_cond, mask, bias,
                  io_dtype=jnp.bfloat16, out_dtype=jnp.bfloat16):
    B, C, H, W = y_0.shape
    HW = H * W

    # Fold batch into the block so bpb*C fills the 8 vreg sublanes.
    bpb = max(1, min(B, 8 // max(C, 1)))
    while B % bpb:
        bpb -= 1
    nb = B // bpb

    io_bytes = jnp.finfo(io_dtype).bits // 8
    out_bytes = jnp.finfo(out_dtype).bits // 8
    # Per hw element, double-buffered: 3 image inputs + mask + output.
    per_elem = 2 * bpb * ((3 * C + 1) * io_bytes + C * out_bytes)
    # 12 MiB working-set budget: fits v7x's 64 MiB VMEM (per TC) with headroom,
    # and trivially fits v5e/v6e's 128 MiB.
    HWp, hw_tile = _pick_hw_tiling(HW, per_elem, budget_bytes=12 << 20)
    n_hw = HWp // hw_tile

    def flat(x, ch):                                  # reshape (no transpose), bf16
        xr = x.reshape(B, ch, HW).astype(io_dtype)
        if HWp != HW:
            xr = jnp.pad(xr, ((0, 0), (0, 0), (0, HWp - HW)))
        return xr

    y0f, nzf, ycf = flat(y_0, C), flat(noise, C), flat(y_cond, C)
    mf = flat(mask, 1)

    # Pack per-batch scalars once: [sqrt(g) | sqrt(1-g) | bias], each (C, 1).
    sg = sample_gammas.reshape(B, 1, 1, 1).astype(jnp.float32)
    pb = jnp.concatenate([
        jnp.broadcast_to(jnp.sqrt(sg), (B, 1, C, 1)),
        jnp.broadcast_to(jnp.sqrt(1.0 - sg), (B, 1, C, 1)),
        bias.reshape(B, 1, C, 1).astype(jnp.float32),
    ], axis=1)                                        # (B, 3, C, 1)

    out = pl.pallas_call(
        _fused_denoise_kernel,
        out_shape=jax.ShapeDtypeStruct((B, C, HWp), out_dtype),
        grid=(nb, n_hw),
        in_specs=[
            pl.BlockSpec((bpb, 3, C, 1), lambda bi, j: (bi, 0, 0, 0)),   # pb
            pl.BlockSpec((bpb, C, hw_tile), lambda bi, j: (bi, 0, j)),   # y_0
            pl.BlockSpec((bpb, C, hw_tile), lambda bi, j: (bi, 0, j)),   # noise
            pl.BlockSpec((bpb, C, hw_tile), lambda bi, j: (bi, 0, j)),   # y_cond
            pl.BlockSpec((bpb, 1, hw_tile), lambda bi, j: (bi, 0, j)),   # mask
            pl.BlockSpec((C, C), lambda bi, j: (0, 0)),                  # w_cond
            pl.BlockSpec((C, C), lambda bi, j: (0, 0)),                  # w_noisy
        ],
        out_specs=pl.BlockSpec((bpb, C, hw_tile), lambda bi, j: (bi, 0, j)),
        compiler_params=pltpu.CompilerParams(
            dimension_semantics=("parallel", "parallel"),
            vmem_limit_bytes=32 * 1024 * 1024),
    )(pb, y0f, nzf, ycf, mf, params["w_cond"], params["w_noisy"])

    if HWp != HW:
        out = out[:, :, :HW]
    return out.reshape(B, C, H, W)


# ---------------------------------------------------------------------------
# Glue: noise schedule, synthetic params, DiffusionGenerator.forward wrapper
# ---------------------------------------------------------------------------
def make_gammas(num_timesteps):
    betas = jnp.linspace(1e-4, 2e-2, num_timesteps, dtype=jnp.float32)
    return jnp.cumprod(1.0 - betas)                   # gammas_train, (T,)


def init_params(key, C, D):
    ks = jax.random.split(key, 5)
    s = 0.02
    return {
        # cond_embed: Linear(D, D) -> SiLU -> Linear(D, D); weights are (in, out)
        "w1": jax.random.normal(ks[0], (D, D), jnp.float32) * s,
        "b1": jnp.zeros((1, D), jnp.float32),
        "w2": jax.random.normal(ks[1], (D, D), jnp.float32) * s,
        "b2": jnp.zeros((1, D), jnp.float32),
        # stand-in denoiser 1x1-conv weight (C_out, C_in), pre-split along the
        # channel-concat axis: full weight would be concat([w_cond, w_noisy], 1)
        "w_cond": jax.random.normal(ks[2], (C, C), jnp.float32) * s,
        "w_noisy": jax.random.normal(ks[3], (C, C), jnp.float32) * s,
        # gamma-embedding -> per-channel bias projection
        "p_dn": jax.random.normal(ks[4], (D, C), jnp.float32) * s,
    }


def diffusion_generator_forward(params, gammas_train, y_0, y_cond, mask, noise,
                                key, cls=None, ref=None, dropout_prob=0.0):
    """Mirrors DiffusionGenerator.forward (training path)."""
    del cls, ref, dropout_prob   # unused by the stand-in denoiser
    B, C, H, W = y_0.shape
    T = gammas_train.shape[0]
    kt, ku, kn = jax.random.split(key, 3)

    if noise is None:
        noise = jax.random.normal(kn, y_0.shape, y_0.dtype)
    if mask is None:
        mask = jnp.ones((B, 1, H, W), y_0.dtype)

    # t ~ randint(1, T); sample_gammas interpolated between gammas[t-1], gammas[t]
    t = jax.random.randint(kt, (B,), 1, T)
    gamma_t1 = gammas_train[t - 1].reshape(B, 1)
    # Name kept from the (oddly named) reference: this is gamma[t], NOT a sqrt.
    sqrt_gamma_t2 = gammas_train[t].reshape(B, 1)
    u = jax.random.uniform(ku, (B, 1), jnp.float32)
    sample_gammas = (sqrt_gamma_t2 - gamma_t1) * u + gamma_t1     # (B, 1)

    # cond_embed MLP + bias projection (plain jnp -- tiny, fused by XLA)
    bias = compute_gamma_bias(params, sample_gammas)              # (B, C)

    # q_sample + mask blend + stand-in denoiser, fully fused in one kernel.
    noise_hat = fused_denoise(params, sample_gammas, y_0, noise, y_cond, mask,
                              bias)                               # (B, C, H, W)
    return noise, noise_hat


if __name__ == "__main__":
    key = jax.random.PRNGKey(0)
    B, C, H, W = 2, 4, 16, 16
    D = 32      # cond_embed_dim / cond_embed_gammas
    T = 64      # num_timesteps_train

    ks = jax.random.split(key, 6)
    y_0 = jax.random.normal(ks[0], (B, C, H, W), jnp.float32)
    y_cond = jax.random.normal(ks[1], (B, C, H, W), jnp.float32)
    mask = (jax.random.uniform(ks[2], (B, 1, H, W)) > 0.5).astype(jnp.float32)
    noise = jax.random.normal(ks[3], (B, C, H, W), jnp.float32)

    params = init_params(ks[4], C, D)
    gammas_train = make_gammas(T)

    fwd = jax.jit(diffusion_generator_forward)
    noise_out, noise_hat = fwd(params, gammas_train, y_0, y_cond, mask, noise,
                               key=ks[5])
    jax.block_until_ready((noise_out, noise_hat))

    assert noise_out.shape == (B, C, H, W)
    assert noise_hat.shape == (B, C, H, W)
    assert noise_hat.dtype == jnp.bfloat16
    assert bool(jnp.all(jnp.isfinite(noise_hat.astype(jnp.float32))))

    # Correctness spot-check of the fused kernel against a plain-jnp reference
    # (built from the same bf16-quantized inputs the kernel streams).
    sg_test = jnp.array([[0.3], [0.7]], jnp.float32)
    bias_test = compute_gamma_bias(params, sg_test)
    out_k = fused_denoise(params, sg_test, y_0, noise, y_cond, mask, bias_test)

    q = lambda x: x.astype(jnp.bfloat16).astype(jnp.float32)
    y0q, nzq, ycq, mq = q(y_0), q(noise), q(y_cond), q(mask)
    sgr = sg_test.reshape(B, 1, 1, 1)
    y_noisy = jnp.sqrt(sgr) * y0q + jnp.sqrt(1.0 - sgr) * nzq
    tm = jnp.clip(mq, 0.0, 1.0)
    y_noisy = y_noisy * tm + (1.0 - tm) * y0q
    ref = (jnp.einsum("oc,bchw->bohw", params["w_cond"], ycq)
           + jnp.einsum("oc,bchw->bohw", params["w_noisy"], y_noisy)
           + bias_test.reshape(B, C, 1, 1))
    assert jnp.allclose(out_k.astype(jnp.float32), ref, atol=1e-2, rtol=1e-1)

    print("KERNEL_OK")
</pallas_src>

<mosaic_0001>
module attributes {stable_mosaic.version = 11 : i64} {
  func.func @_fused_denoise_kernel(%arg0: i32, %arg1: i32, %arg2: memref<2x3x4x1xf32, #tpu.memory_space<vmem>>, %arg3: memref<2x4x256xbf16, #tpu.memory_space<vmem>>, %arg4: memref<2x4x256xbf16, #tpu.memory_space<vmem>>, %arg5: memref<2x4x256xbf16, #tpu.memory_space<vmem>>, %arg6: memref<2x1x256xbf16, #tpu.memory_space<vmem>>, %arg7: memref<4x4xf32, #tpu.memory_space<vmem>>, %arg8: memref<4x4xf32, #tpu.memory_space<vmem>>, %arg9: memref<2x4x256xbf16, #tpu.memory_space<vmem>>) attributes {dimension_semantics = [#tpu.dimension_semantics<parallel>, #tpu.dimension_semantics<parallel>], iteration_bounds = array<i64: 1, 1>, scalar_prefetch = 0 : i64, scratch_operands = 0 : i64, tpu.core_type = #tpu.core_type<tc>, window_params = [{transform_indices = @transform_0, window_bounds = array<i64: 2, 3, 4, 1>}, {transform_indices = @transform_1, window_bounds = array<i64: 2, 4, 256>}, {transform_indices = @transform_2, window_bounds = array<i64: 2, 4, 256>}, {transform_indices = @transform_3, window_bounds = array<i64: 2, 4, 256>}, {transform_indices = @transform_4, window_bounds = array<i64: 2, 1, 256>}, {pipeline_mode = #tpu.pipeline_mode<synchronous>, transform_indices = @transform_5, window_bounds = array<i64: 4, 4>}, {pipeline_mode = #tpu.pipeline_mode<synchronous>, transform_indices = @transform_6, window_bounds = array<i64: 4, 4>}, {transform_indices = @transform_7, window_bounds = array<i64: 2, 4, 256>}]} {
    %c0 = arith.constant 0 : index
    %c0_0 = arith.constant 0 : index
    %c0_1 = arith.constant 0 : index
    %c0_2 = arith.constant 0 : index
    %0 = vector.load %arg2[%c0, %c0_0, %c0_1, %c0_2] : memref<2x3x4x1xf32, #tpu.memory_space<vmem>>, vector<2x3x4x1xf32>
    %1 = vector.extract_strided_slice %0 {offsets = [0, 0, 0, 0], sizes = [2, 1, 4, 1], strides = [1, 1, 1, 1]} : vector<2x3x4x1xf32> to vector<2x1x4x1xf32>
    %2 = vector.shape_cast %1 : vector<2x1x4x1xf32> to vector<2x4x1xf32>
    %3 = vector.extract_strided_slice %0 {offsets = [0, 1, 0, 0], sizes = [2, 1, 4, 1], strides = [1, 1, 1, 1]} : vector<2x3x4x1xf32> to vector<2x1x4x1xf32>
    %4 = vector.shape_cast %3 : vector<2x1x4x1xf32> to vector<2x4x1xf32>
    %5 = vector.extract_strided_slice %0 {offsets = [0, 2, 0, 0], sizes = [2, 1, 4, 1], strides = [1, 1, 1, 1]} : vector<2x3x4x1xf32> to vector<2x1x4x1xf32>
    %6 = vector.shape_cast %5 : vector<2x1x4x1xf32> to vector<2x4x1xf32>
    %c0_3 = arith.constant 0 : index
    %c0_4 = arith.constant 0 : index
    %c0_5 = arith.constant 0 : index
    %7 = vector.load %arg3[%c0_3, %c0_4, %c0_5] : memref<2x4x256xbf16, #tpu.memory_space<vmem>>, vector<2x4x256xbf16>
    %8 = arith.extf %7 : vector<2x4x256xbf16> to vector<2x4x256xf32>
    %c0_6 = arith.constant 0 : index
    %c0_7 = arith.constant 0 : index
    %c0_8 = arith.constant 0 : index
    %9 = vector.load %arg4[%c0_6, %c0_7, %c0_8] : memref<2x4x256xbf16, #tpu.memory_space<vmem>>, vector<2x4x256xbf16>
    %10 = arith.extf %9 : vector<2x4x256xbf16> to vector<2x4x256xf32>
    %c0_9 = arith.constant 0 : index
    %c0_10 = arith.constant 0 : index
    %c0_11 = arith.constant 0 : index
    %11 = vector.load %arg5[%c0_9, %c0_10, %c0_11] : memref<2x4x256xbf16, #tpu.memory_space<vmem>>, vector<2x4x256xbf16>
    %12 = arith.extf %11 : vector<2x4x256xbf16> to vector<2x4x256xf32>
    %c0_12 = arith.constant 0 : index
    %c0_13 = arith.constant 0 : index
    %c0_14 = arith.constant 0 : index
    %13 = vector.load %arg6[%c0_12, %c0_13, %c0_14] : memref<2x1x256xbf16, #tpu.memory_space<vmem>>, vector<2x1x256xbf16>
    %14 = arith.extf %13 : vector<2x1x256xbf16> to vector<2x1x256xf32>
    %cst = arith.constant 0.000000e+00 : f32
    %cst_15 = arith.constant 1.000000e+00 : f32
    %15 = vector.broadcast %cst : f32 to vector<2x1x256xf32>
    %16 = arith.maximumf %15, %14 : vector<2x1x256xf32>
    %17 = vector.broadcast %cst_15 : f32 to vector<2x1x256xf32>
    %18 = arith.minimumf %17, %16 : vector<2x1x256xf32>
    %19 = vector.broadcast %2 : vector<2x4x1xf32> to vector<2x4x256xf32>
    %20 = arith.mulf %19, %8 : vector<2x4x256xf32>
    %21 = vector.broadcast %4 : vector<2x4x1xf32> to vector<2x4x256xf32>
    %22 = arith.mulf %21, %10 : vector<2x4x256xf32>
    %23 = arith.addf %20, %22 : vector<2x4x256xf32>
    %24 = arith.subf %23, %8 : vector<2x4x256xf32>
    %25 = vector.broadcast %18 : vector<2x1x256xf32> to vector<2x4x256xf32>
    %26 = arith.mulf %25, %24 : vector<2x4x256xf32>
    %27 = arith.addf %8, %26 : vector<2x4x256xf32>
    %c0_16 = arith.constant 0 : index
    %c0_17 = arith.constant 0 : index
    %28 = vector.load %arg7[%c0_16, %c0_17] : memref<4x4xf32, #tpu.memory_space<vmem>>, vector<4x4xf32>
    %c0_18 = arith.constant 0 : index
    %c0_19 = arith.constant 0 : index
    %29 = vector.load %arg8[%c0_18, %c0_19] : memref<4x4xf32, #tpu.memory_space<vmem>>, vector<4x4xf32>
    %30 = vector.extract_strided_slice %12 {offsets = [0, 0, 0], sizes = [1, 4, 256], strides = [1, 1, 1]} : vector<2x4x256xf32> to vector<1x4x256xf32>
    %31 = vector.shape_cast %30 : vector<1x4x256xf32> to vector<4x256xf32>
    %cst_20 = arith.constant dense<0.000000e+00> : vector<4x256xf32>
    %32 = tpu.matmul %28, %31, %cst_20 {dimension_numbers = #tpu.dot_dimension_numbers<[1], [0], [0], [1], [0, 0, 1, 1], [], []>} : vector<4x4xf32>, vector<4x256xf32>, vector<4x256xf32> -> vector<4x256xf32>
    %33 = vector.extract_strided_slice %27 {offsets = [0, 0, 0], sizes = [1, 4, 256], strides = [1, 1, 1]} : vector<2x4x256xf32> to vector<1x4x256xf32>
    %34 = vector.shape_cast %33 : vector<1x4x256xf32> to vector<4x256xf32>
    %cst_21 = arith.constant dense<0.000000e+00> : vector<4x256xf32>
    %35 = tpu.matmul %29, %34, %cst_21 {dimension_numbers = #tpu.dot_dimension_numbers<[1], [0], [0], [1], [0, 0, 1, 1], [], []>} : vector<4x4xf32>, vector<4x256xf32>, vector<4x256xf32> -> vector<4x256xf32>
    %36 = arith.addf %32, %35 : vector<4x256xf32>
    %37 = vector.extract_strided_slice %6 {offsets = [0, 0, 0], sizes = [1, 4, 1], strides = [1, 1, 1]} : vector<2x4x1xf32> to vector<1x4x1xf32>
    %38 = vector.shape_cast %37 : vector<1x4x1xf32> to vector<4x1xf32>
    %39 = vector.broadcast %38 : vector<4x1xf32> to vector<4x256xf32>
    %40 = arith.addf %36, %39 : vector<4x256xf32>
    %41 = arith.truncf %40 : vector<4x256xf32> to vector<4x256xbf16>
    %c0_22 = arith.constant 0 : index
    %c0_23 = arith.constant 0 : index
    %c0_24 = arith.constant 0 : index
    %42 = vector.load %arg9[%c0_22, %c0_23, %c0_24] : memref<2x4x256xbf16, #tpu.memory_space<vmem>>, vector<1x4x256xbf16>
    %43 = vector.shape_cast %42 : vector<1x4x256xbf16> to vector<4x256xbf16>
    %44 = vector.shape_cast %41 : vector<4x256xbf16> to vector<1x4x256xbf16>
    tpu.vector_store %arg9[%c0_22, %c0_23, %c0_24], %44 {strides = array<i32>} : memref<2x4x256xbf16, #tpu.memory_space<vmem>>, vector<1x4x256xbf16>,
    %45 = vector.extract_strided_slice %12 {offsets = [1, 0, 0], sizes = [1, 4, 256], strides = [1, 1, 1]} : vector<2x4x256xf32> to vector<1x4x256xf32>
    %46 = vector.shape_cast %45 : vector<1x4x256xf32> to vector<4x256xf32>
    %cst_25 = arith.constant dense<0.000000e+00> : vector<4x256xf32>
    %47 = tpu.matmul %28, %46, %cst_25 {dimension_numbers = #tpu.dot_dimension_numbers<[1], [0], [0], [1], [0, 0, 1, 1], [], []>} : vector<4x4xf32>, vector<4x256xf32>, vector<4x256xf32> -> vector<4x256xf32>
    %48 = vector.extract_strided_slice %27 {offsets = [1, 0, 0], sizes = [1, 4, 256], strides = [1, 1, 1]} : vector<2x4x256xf32> to vector<1x4x256xf32>
    %49 = vector.shape_cast %48 : vector<1x4x256xf32> to vector<4x256xf32>
    %cst_26 = arith.constant dense<0.000000e+00> : vector<4x256xf32>
    %50 = tpu.matmul %29, %49, %cst_26 {dimension_numbers = #tpu.dot_dimension_numbers<[1], [0], [0], [1], [0, 0, 1, 1], [], []>} : vector<4x4xf32>, vector<4x256xf32>, vector<4x256xf32> -> vector<4x256xf32>
    %51 = arith.addf %47, %50 : vector<4x256xf32>
    %52 = vector.extract_strided_slice %6 {offsets = [1, 0, 0], sizes = [1, 4, 1], strides = [1, 1, 1]} : vector<2x4x1xf32> to vector<1x4x1xf32>
    %53 = vector.shape_cast %52 : vector<1x4x1xf32> to vector<4x1xf32>
    %54 = vector.broadcast %53 : vector<4x1xf32> to vector<4x256xf32>
    %55 = arith.addf %51, %54 : vector<4x256xf32>
    %56 = arith.truncf %55 : vector<4x256xf32> to vector<4x256xbf16>
    %c1 = arith.constant 1 : index
    %c0_27 = arith.constant 0 : index
    %c0_28 = arith.constant 0 : index
    %57 = vector.load %arg9[%c1, %c0_27, %c0_28] : memref<2x4x256xbf16, #tpu.memory_space<vmem>>, vector<1x4x256xbf16>
    %58 = vector.shape_cast %57 : vector<1x4x256xbf16> to vector<4x256xbf16>
    %59 = vector.shape_cast %56 : vector<4x256xbf16> to vector<1x4x256xbf16>
    tpu.vector_store %arg9[%c1, %c0_27, %c0_28], %59 {strides = array<i32>} : memref<2x4x256xbf16, #tpu.memory_space<vmem>>, vector<1x4x256xbf16>,
    return
  }
  func.func @transform_0(%arg0: i32, %arg1: i32) -> (i32, i32, i32, i32) {
    %c0_i32 = arith.constant 0 : i32
    %c0_i32_0 = arith.constant 0 : i32
    %c0_i32_1 = arith.constant 0 : i32
    %c0_i32_2 = arith.constant 0 : i32
    return %arg0, %c0_i32, %c0_i32_0, %c0_i32_1 : i32, i32, i32, i32
  }
  func.func @transform_1(%arg0: i32, %arg1: i32) -> (i32, i32, i32) {
    %c0_i32 = arith.constant 0 : i32
    %c0_i32_0 = arith.constant 0 : i32
    return %arg0, %c0_i32, %arg1 : i32, i32, i32
  }
  func.func @transform_2(%arg0: i32, %arg1: i32) -> (i32, i32, i32) {
    %c0_i32 = arith.constant 0 : i32
    %c0_i32_0 = arith.constant 0 : i32
    return %arg0, %c0_i32, %arg1 : i32, i32, i32
  }
  func.func @transform_3(%arg0: i32, %arg1: i32) -> (i32, i32, i32) {
    %c0_i32 = arith.constant 0 : i32
    %c0_i32_0 = arith.constant 0 : i32
    return %arg0, %c0_i32, %arg1 : i32, i32, i32
  }
  func.func @transform_4(%arg0: i32, %arg1: i32) -> (i32, i32, i32) {
    %c0_i32 = arith.constant 0 : i32
    %c0_i32_0 = arith.constant 0 : i32
    return %arg0, %c0_i32, %arg1 : i32, i32, i32
  }
  func.func @transform_5(%arg0: i32, %arg1: i32) -> (i32, i32) {
    %c0_i32 = arith.constant 0 : i32
    %c0_i32_0 = arith.constant 0 : i32
    %c0_i32_1 = arith.constant 0 : i32
    return %c0_i32, %c0_i32_0 : i32, i32
  }
  func.func @transform_6(%arg0: i32, %arg1: i32) -> (i32, i32) {
    %c0_i32 = arith.constant 0 : i32
    %c0_i32_0 = arith.constant 0 : i32
    %c0_i32_1 = arith.constant 0 : i32
    return %c0_i32, %c0_i32_0 : i32, i32
  }
  func.func @transform_7(%arg0: i32, %arg1: i32) -> (i32, i32, i32) {
    %c0_i32 = arith.constant 0 : i32
    %c0_i32_0 = arith.constant 0 : i32
    return %arg0, %c0_i32, %arg1 : i32, i32, i32
  }
}

</mosaic_0001>

<bundles_post_ra>
// kernel: diffusion_generator_forward.3
= control target key start
LH: loop header
LB: loop body
LE: loop exit
PB: predicated region body
PF: predicated region fallthrough
CT: control target
= control target key end

     0   :  { %v426_v0 = vmov 0   ;;  %vm149_vm0 = vcmask 1043456   ;;  %vm162_vm1 = vcmask 31744   ;;  %vm271_vm2 = vcmask 1041408   ;;  %s542_s0 = inlined_call_operand.vmem [shape: f32[2,3,4,1], index: 0, kind: input, shape index: {}]   ;;  %s543_s1 = inlined_call_operand.vmem [shape: bf16[2,4,256], index: 1, kind: input, shape index: {}]   ;;  %s544_s2 = inlined_call_operand.vmem [shape: bf16[2,4,256], index: 2, kind: input, shape index: {}]   ;;  %s545_s4 = inlined_call_operand.vmem [shape: bf16[2,1,256], index: 4, kind: input, shape index: {}]   ;;  %s546_s3 = inlined_call_operand.vmem [shape: bf16[2,4,256], index: 3, kind: input, shape index: {}]   ;;  %s547_s6 = inlined_call_operand.vmem [shape: f32[4,4], index: 6, kind: input, shape index: {}]   ;;  %s548_s5 = inlined_call_operand.vmem [shape: f32[4,4], index: 5, kind: input, shape index: {}]   ;;  %s549_s7 = inlined_call_operand.vmem [shape: bf16[2,4,256], index: 7, kind: output, shape index: {}]  }
   0x1   :  { %423 = vset.pattern.permute.xlu0 %v426_v0  ;;  %v26_v1 = vld [vmem:[%s542_s0] sm:$0xf]  ;;  %424 = vset.pattern.permute.xlu1 %v426_v0  ;;  %v29_v2 = vld [vmem:[%s542_s0 + $0xc] sm:$0xf]  ;;  %v27_v5 = vld [vmem:[%s542_s0 + $0x4] sm:$0xf] }
   0x2   :  { %54 = vperm.xlu0 %423, %v26_v1   ;;  %59 = vperm.xlu1 %424, %v29_v2   ;;  %v411_v3 = vld [vmem:[%s543_s1] sm:$0xff]   ;;  %v30_v6 = vld [vmem:[%s542_s0 + $0x10] sm:$0xf]  ;;  %v28_v63 = vld [vmem:[%s542_s0 + $0x8] sm:$0xf] }
   0x3   :  { %v476_v4 = vunpack.c.l.bf16 %v411_v3  ;;  %425 = vset.pattern.permute.xlu2 %v426_v0  ;;  %v485_v8 = vunpack.c.h.bf16 %v411_v3  ;;  %v415_v10 = vld [vmem:[%s544_s2] sm:$0xff]  }
   0x4   :  { %v416_v11 = vunpack.c.l.bf16 %v415_v10  ;;  %v417_v12 = vunpack.c.h.bf16 %v415_v10  ;;  %v44_v19 = vld [vmem:[%s545_s4] sm:$0x3]  ;;  %v45_v24 = vld [vmem:[%s545_s4 + $0x2] sm:$0x3]  ;;  %263 = vperm.xlu2 %425, %v28_v63  }
   0x5   :  { %64 = vst [vmem:[#allocation1] ss:$2 sm:$0xff] %v476_v4  ;;  %v46_v20 = vunpack.c.l.bf16 %v44_v19  ;;  %v47_v26 = vunpack.c.l.bf16 %v45_v24  ;;  %v419_v62 = vld [vmem:[%s546_s3] sm:$0xff]  }
   0x6   :  { %68 = vst [vmem:[#allocation1 + $0x10] ss:$2 sm:$0xff] %v485_v8  ;;  %v420_v3 = vunpack.c.l.bf16 %v419_v62 }
   0x7   :  { %v48_v21 = vmax.f32 %v46_v20, 0.0  ;;  %v49_v30 = vmax.f32 %v47_v26, 0.0 }
   0x9   :  { %v50_v25 = vmin.f32 %v48_v21, 1.0  ;;  %v51_v42 = vmin.f32 %v49_v30, 1.0 }
   0xa   :  { %81 = vperm.xlu0 %423, %v27_v5   ;;  %86 = vperm.xlu1 %424, %v30_v6   ;;  %v157_v5 = vld [vmem:[%s547_s6] sm:$0xf]  ;;  %v31_v6 = vld [vmem:[%s542_s0 + $0x14] sm:$0xf] }
   0xb   :  { %v128_v27 = vperm.slane %v50_v25, 2  ;;  %v127_v28 = vperm.slane %v50_v25, 0  ;;  %v130_v48 = vperm.slane %v51_v42, 2  ;;  %v129_v59 = vperm.slane %v51_v42, 0 }
   0xc   :  { %v65_v7 = vld.sshfl [vmem:[#allocation1] sm:$0xff pattern:$0x75316420]  ;;  %v66_v9 = vld.sshfl [vmem:[#allocation1 + $0x8] sm:$0xff pattern:$0x75316420]  ;;  %375 = vperm.xlu2 %425, %v31_v6  }
   0xd   :  { %91 = vst [vmem:[#allocation1] ss:$2 sm:$0xff] %v416_v11  ;;  %v69_v13 = vld.sshfl [vmem:[#allocation1 + $0x10] sm:$0xff pattern:$0x75316420]  ;;  %v136_v38 = vperm.slane %v128_v27, 0 }
   0xe   :  { %v70_v14 = vld.sshfl [vmem:[#allocation1 + $0x18] sm:$0xff pattern:$0x75316420]  ;;  %v135_v44 = vperm.slane %v127_v28, 0  ;;  %v138_v57 = vperm.slane %v130_v48, 0  ;;  %v137_v1 = vperm.slane %v129_v59, 0 }
   0xf   :  { %95 = vst [vmem:[#allocation1 + $0x10] ss:$2 sm:$0xff] %v417_v12 }
  0x14   :  { %v92_v15 = vld.sshfl [vmem:[#allocation1] sm:$0xff pattern:$0x75316420]  ;;  %v93_v16 = vld.sshfl [vmem:[#allocation1 + $0x8] sm:$0xff pattern:$0x75316420] }
  0x15   :  { %110 = vst [vmem:[#allocation1] ss:$2 sm:$0xff] %v476_v4 }
  0x16   :  { %v96_v17 = vld.sshfl [vmem:[#allocation1 + $0x10] sm:$0xff pattern:$0x75316420]  ;;  %v97_v18 = vld.sshfl [vmem:[#allocation1 + $0x18] sm:$0xff pattern:$0x75316420] }
  0x17   :  { %114 = vst [vmem:[#allocation1 + $0x10] ss:$2 sm:$0xff] %v485_v8 }
  0x1c   :  { %v111_v36 = vld.sshfl [vmem:[#allocation1] sm:$0xff pattern:$0x75316420]  ;;  %v112_v37 = vld.sshfl [vmem:[#allocation1 + $0x8] sm:$0xff pattern:$0x75316420] }
  0x1e   :  { %v116_v53 = vld.sshfl [vmem:[#allocation1 + $0x18] sm:$0xff pattern:$0x75316420]  ;;  %v115_v61 = vld.sshfl [vmem:[#allocation1 + $0x10] sm:$0xff pattern:$0x75316420] }
  0x5e   :  { %v264_v26 = vpop.permute.xlu2 %263 }
  0x74   :  { %v55_v22 = vpop.permute.xlu0 %54  ;;  %v60_v23 = vpop.permute.xlu1 %59 }
  0x75   :  { %v75_v31 = vmul.f32 %v65_v7, %v55_v22  ;;  %v76_v32 = vmul.f32 %v66_v9, %v55_v22  ;;  %v78_v41 = vmul.f32 %v70_v14, %v60_v23  ;;  %v77_v50 = vmul.f32 %v69_v13, %v60_v23  ;;  %v156_v13 = vld [vmem:[%s548_s5] sm:$0xf] }
  0x7c   :  { %v82_v29 = vpop.permute.xlu0 %81  ;;  %v87_v35 = vpop.permute.xlu1 %86 }
  0x7d   :  { %v102_v33 = vmul.f32 %v92_v15, %v82_v29  ;;  %v103_v34 = vmul.f32 %v93_v16, %v82_v29  ;;  %v105_v43 = vmul.f32 %v97_v18, %v87_v35  ;;  %v104_v54 = vmul.f32 %v96_v17, %v87_v35 }
  0x7e   :  { %v421_v16 = vunpack.c.h.bf16 %v419_v62 }
  0x7f   :  { %v106_v39 = vadd.f32 %v102_v33, %v75_v31  ;;  %v107_v40 = vadd.f32 %v103_v34, %v76_v32  ;;  %v109_v49 = vadd.f32 %v105_v43, %v78_v41  ;;  %v108_v60 = vadd.f32 %v104_v54, %v77_v50 }
  0x81   :  { %v121_v45 = vsub.f32 %v106_v39, %v111_v36  ;;  %v122_v46 = vsub.f32 %v107_v40, %v112_v37  ;;  %v124_v58 = vsub.f32 %v109_v49, %v116_v53  ;;  %v123_v2 = vsub.f32 %v108_v60, %v115_v61 }
  0x83   :  { %v140_v47 = vmul.f32 %v136_v38, %v122_v46  ;;  %v139_v51 = vmul.f32 %v135_v44, %v121_v45  ;;  %v142_v0 = vmul.f32 %v138_v57, %v124_v58  ;;  %v141_v7 = vmul.f32 %v137_v1, %v123_v2  ;;  %v376_v38 = vpop.permute.xlu2 %375 }
  0x85   :  { %v147_v52 = vrot.slane %v140_v47, 4 }
  0x87   :  { %v150_v55 = vsel %vm149_vm0, %v139_v51, %v147_v52 }
  0x88   :  { %v154_v56 = vadd.f32 %v476_v4, %v150_v55  ;;  %v148_v4 = vrot.slane %v142_v0, 4 }
  0x8a   :  { %159 = vst [vmem:[#allocation1] ss:$2 sm:$0xff] %v154_v56  ;;  %v151_v11 = vsel %vm149_vm0, %v141_v7, %v148_v4 }
  0x8b   :  { %v155_v12 = vadd.f32 %v485_v8, %v151_v11 }
  0x91   :  { %v160_v9 = vld.sshfl [vmem:[#allocation1] sm:$0xff pattern:$0x75316420]  ;;  %v161_v10 = vld.sshfl [vmem:[#allocation1 + $0x8] sm:$0xff pattern:$0x75316420] }
  0x92   :  { %393 = vmatpush.msk.msra.mxu0 %vm149_vm0, %v160_v9  ;;  %395 = vmatpush.msk.msra.mxu1 %vm149_vm0, %v161_v10  ;;  %211 = vst [vmem:[#allocation1] ss:$2 sm:$0xff] %v420_v3 }
  0x93   :  { %394 = vmatmul.msk.f32.vlgmr.msra.gmra.mxu0 %vm162_vm1, %v157_v5  ;;  %396 = vmatmul.msk.f32.vlgmr.msra.gmra.mxu1 %vm162_vm1, %v157_v5 }
  0x99   :  { %v212_v14 = vld.sshfl [vmem:[#allocation1] sm:$0xff pattern:$0x75316420]  ;;  %v213_v15 = vld.sshfl [vmem:[#allocation1 + $0x8] sm:$0xff pattern:$0x75316420] }
  0x9a   :  { %397 = vmatpush.msk.msra.mxu2 %vm149_vm0, %v212_v14  ;;  %399 = vmatpush.msk.msra.mxu3 %vm149_vm0, %v213_v15  ;;  %278 = vst [vmem:[#allocation1] ss:$2 sm:$0xff] %v155_v12 }
  0x9b   :  { %398 = vmatmul.msk.f32.vlgmr.msra.gmra.mxu2 %vm162_vm1, %v156_v13  ;;  %400 = vmatmul.msk.f32.vlgmr.msra.gmra.mxu3 %vm162_vm1, %v156_v13 }
  0xa1   :  { %v279_v17 = vld.sshfl [vmem:[#allocation1] sm:$0xff pattern:$0x75316420]  ;;  %v280_v18 = vld.sshfl [vmem:[#allocation1 + $0x8] sm:$0xff pattern:$0x75316420] }
  0xa2   :  { %401 = vmatpush.msk.msrb.mxu0 %vm149_vm0, %v279_v17  ;;  %403 = vmatpush.msk.msrb.mxu1 %vm149_vm0, %v280_v18  ;;  %326 = vst [vmem:[#allocation1] ss:$2 sm:$0xff] %v421_v16 }
  0xa3   :  { %402 = vmatmul.msk.f32.vlgmr.msrb.gmra.mxu0 %vm162_vm1, %v157_v5  ;;  %404 = vmatmul.msk.f32.vlgmr.msrb.gmra.mxu1 %vm162_vm1, %v157_v5 }
  0xa9   :  { %v327_v8 = vld.sshfl [vmem:[#allocation1] sm:$0xff pattern:$0x75316420]  ;;  %v328_v19 = vld.sshfl [vmem:[#allocation1 + $0x8] sm:$0xff pattern:$0x75316420] }
  0xaa   :  { %405 = vmatpush.msk.msrb.mxu2 %vm149_vm0, %v327_v8  ;;  %407 = vmatpush.msk.msrb.mxu3 %vm149_vm0, %v328_v19 }
  0xab   :  { %406 = vmatmul.msk.f32.vlgmr.msrb.gmra.mxu2 %vm162_vm1, %v156_v13  ;;  %408 = vmatmul.msk.f32.vlgmr.msrb.gmra.mxu3 %vm162_vm1, %v156_v13 }
 0x110   :  { %v187_v20 = vpop.f32.mrf.mxu0  ;;  %v207_v21 = vpop.f32.mrf.mxu1 }
 0x11e   :  { %v238_v22 = vpop.f32.mrf.mxu2  ;;  %v258_v23 = vpop.f32.mrf.mxu3 }
 0x11f   :  { %v239_v24 = vadd.f32 %v238_v22, %v187_v20  ;;  %v259_v25 = vadd.f32 %v258_v23, %v207_v21 }
 0x120   :  { %v302_v32 = vpop.f32.mrf.mxu0  ;;  %v322_v33 = vpop.f32.mrf.mxu1 }
 0x121   :  { %v266_v27 = vadd.f32 %v264_v26, %v239_v24  ;;  %v267_v28 = vadd.f32 %v264_v26, %v259_v25 }
 0x123   :  { %v268_v29 = vpack.c.bf16 %v267_v28, %v266_v27 }
 0x125   :  { %v270_v30 = vrot.slane %v268_v29, 2 }
 0x127   :  { %v274_v31 = vsel %vm271_vm2, %v268_v29, %v270_v30 }
 0x128   :  { %276 = vst [vmem:[%s549_s7] sm:$0xf] %v274_v31 }
 0x12e   :  { %v350_v34 = vpop.f32.mrf.mxu2  ;;  %v370_v35 = vpop.f32.mrf.mxu3 }
 0x12f   :  { %v351_v36 = vadd.f32 %v350_v34, %v302_v32  ;;  %v371_v37 = vadd.f32 %v370_v35, %v322_v33 }
 0x131   :  { %v378_v39 = vadd.f32 %v376_v38, %v351_v36  ;;  %v379_v40 = vadd.f32 %v376_v38, %v371_v37 }
 0x133   :  { %v380_v41 = vpack.c.bf16 %v379_v40, %v378_v39 }
 0x135   :  { %v382_v42 = vrot.slane %v380_v41, 2 }
 0x137   :  { %v385_v43 = vsel %vm271_vm2, %v380_v41, %v382_v42 }
 0x138   :  { %409 = vst [vmem:[%s549_s7 + $0x4] sm:$0xf] %v385_v43 }

</bundles_post_ra>
